<compile_context>
chip_gen: v5e
topology: v5e:2x2
jax: 0.10.0
libtpu: 0.0.40
codegen_flags: <defaults>
</compile_context>

<pallas_src>
import jax
import jax.numpy as jnp
from jax.experimental import pallas as pl
from jax.experimental.pallas import tpu as pltpu


def critic_kernel(x_ref, w1_ref, w2_ref, w3t_ref, b12_ref, b3_ref, o_ref):
    # Layer 1: bf16 MXU matmul, f32 accumulate; bias + ReLU in f32 on the VPU.
    h1 = jnp.dot(x_ref[...], w1_ref[...], preferred_element_type=jnp.float32)
    h1 = jnp.maximum(h1 + b12_ref[0:1, :], 0.0)

    # Layer 2.
    h2 = jnp.dot(h1.astype(jnp.bfloat16), w2_ref[...],
                 preferred_element_type=jnp.float32)
    h2 = jnp.maximum(h2 + b12_ref[1:2, :], 0.0)

    # Layer 3: out_dim is tiny (typically 1).  An (hid, 1) matmul would use
    # 1/128 (v5e) or 1/256 (v6e/v7x) of the MXU columns, so do it as a VPU
    # multiply + XLU lane reduction (out_dim == 1), keeping the MXU free.
    out_dim = w3t_ref.shape[0]
    if out_dim == 1:
        q = jnp.sum(h2 * w3t_ref[0:1, :], axis=-1, keepdims=True)
    else:
        # General fallback: contract last dims of both (no in-kernel transpose).
        q = jax.lax.dot_general(h2, w3t_ref[...],
                                dimension_numbers=(((1,), (1,)), ((), ())),
                                preferred_element_type=jnp.float32)

    # TODO(synk): out_dim==1 means a lane-sparse (tb, 1) store; if a downstream
    # consumer (e.g. TD error) exists, fuse it here so q never leaves VMEM.
    o_ref[...] = (q + b3_ref[...]).astype(o_ref.dtype)


def example_critic_forward(state, action, params, *, block_b=256):
    """state: (B, Ds), action: (B, Da).
    params: w1 (Ds+Da, hid), b1 (hid,), w2 (hid, hid), b2 (hid,),
            w3 (hid, out), b3 (out,).  Returns f32 (B, out)."""
    B, Ds = state.shape
    Ba, Da = action.shape
    assert Ba == B, "state/action batch mismatch"
    in_dim, hid = params["w1"].shape
    assert Ds + Da == in_dim, (
        f"w1 expects {in_dim} input features, got state {Ds} + action {Da}")
    out_dim = params["w3"].shape[1]

    # Materialize the concat once (single layer-1 dot in the kernel).
    x = jnp.concatenate([state, action], axis=1)

    # bf16 MXU operands; biases and the layer-3 weight row stay f32.
    x_bf = x.astype(jnp.bfloat16)
    w1 = params["w1"].astype(jnp.bfloat16)
    w2 = params["w2"].astype(jnp.bfloat16)
    w3t = params["w3"].T.astype(jnp.float32)                    # (out_dim, hid)
    b12 = jnp.stack([params["b1"], params["b2"]]).astype(jnp.float32)  # (2, hid)
    b3 = params["b3"].reshape(1, out_dim).astype(jnp.float32)

    # Batch tiling: single block if the whole batch fits one tile, otherwise
    # tiles that are a multiple of 16 sublanes (bf16 packing), zero-padding
    # the tail tile (padded rows are sliced off the output).
    tb = min(block_b, B)
    if tb < B:
        tb = max(16, (tb // 16) * 16)
        Bp = pl.cdiv(B, tb) * tb
        if Bp != B:
            x_bf = jnp.pad(x_bf, ((0, Bp - B), (0, 0)))
    else:
        Bp = B
    grid = (Bp // tb,)

    flops = 2 * Bp * (in_dim * hid + hid * hid + hid * out_dim)
    bytes_accessed = (x_bf.size * 2 + w1.size * 2 + w2.size * 2
                      + w3t.size * 4 + b12.size * 4 + b3.size * 4
                      + Bp * out_dim * 4)

    q = pl.pallas_call(
        critic_kernel,
        out_shape=jax.ShapeDtypeStruct((Bp, out_dim), jnp.float32),
        grid=grid,
        in_specs=[
            pl.BlockSpec((tb, in_dim), lambda i: (i, 0)),    # x tile (pipelined)
            pl.BlockSpec((in_dim, hid), lambda i: (0, 0)),   # W1  (VMEM-resident)
            pl.BlockSpec((hid, hid), lambda i: (0, 0)),      # W2
            pl.BlockSpec((out_dim, hid), lambda i: (0, 0)),  # W3^T
            pl.BlockSpec((2, hid), lambda i: (0, 0)),        # [b1; b2]
            pl.BlockSpec((1, out_dim), lambda i: (0, 0)),    # b3
        ],
        out_specs=pl.BlockSpec((tb, out_dim), lambda i: (i, 0)),
        compiler_params=pltpu.CompilerParams(
            dimension_semantics=("parallel",)),
        cost_estimate=pl.CostEstimate(
            flops=flops, transcendentals=0, bytes_accessed=bytes_accessed),
    )(x_bf, w1, w2, w3t, b12, b3)

    return q[:B] if Bp != B else q


def init_params(key, input_size, hidden_size, output_size):
    # Deterministic init mimicking nn.Linear's U(-1/sqrt(fan_in), 1/sqrt(fan_in)).
    ks = jax.random.split(key, 6)

    def lin(kw, kb, fan_in, fan_out):
        bound = 1.0 / jnp.sqrt(fan_in)
        w = jax.random.uniform(kw, (fan_in, fan_out), jnp.float32, -bound, bound)
        b = jax.random.uniform(kb, (fan_out,), jnp.float32, -bound, bound)
        return w, b

    w1, b1 = lin(ks[0], ks[1], input_size, hidden_size)
    w2, b2 = lin(ks[2], ks[3], hidden_size, hidden_size)
    w3, b3 = lin(ks[4], ks[5], hidden_size, output_size)
    return {"w1": w1, "b1": b1, "w2": w2, "b2": b2, "w3": w3, "b3": b3}


if __name__ == "__main__":
    # Shapes consistent with the module: input_size = state_dim + action_dim.
    batch, state_dim, action_dim = 256, 24, 8
    input_size = state_dim + action_dim      # 32
    hidden_size = 32
    output_size = 1

    key = jax.random.PRNGKey(0)
    k_s, k_a, k_p = jax.random.split(key, 3)
    state = jax.random.normal(k_s, (batch, state_dim), jnp.float32)
    action = jax.random.normal(k_a, (batch, action_dim), jnp.float32)
    params = init_params(k_p, input_size, hidden_size, output_size)

    # block_b=128 -> grid=(2,): exercises the batch-parallel pipeline.
    q = example_critic_forward(state, action, params, block_b=128)
    q = jax.block_until_ready(q)

    # Pure-JAX references.
    x = jnp.concatenate([state, action], axis=1)
    h1 = jnp.maximum(x @ params["w1"] + params["b1"], 0.0)
    h2 = jnp.maximum(h1 @ params["w2"] + params["b2"], 0.0)
    q_f32 = h2 @ params["w3"] + params["b3"]

    # bf16-matched reference (same operand rounding as the kernel) -> tight tol.
    bf = lambda a: a.astype(jnp.bfloat16).astype(jnp.float32)
    h1b = jnp.maximum(bf(x) @ bf(params["w1"]) + params["b1"], 0.0)
    h2b = jnp.maximum(bf(h1b) @ bf(params["w2"]) + params["b2"], 0.0)
    q_bf = h2b @ params["w3"] + params["b3"]

    assert q.shape == (batch, output_size)
    assert jnp.allclose(q, q_bf, atol=2e-3, rtol=2e-3), \
        float(jnp.max(jnp.abs(q - q_bf)))
    assert jnp.allclose(q, q_f32, atol=5e-2, rtol=5e-2), \
        float(jnp.max(jnp.abs(q - q_f32)))

    print("KERNEL_OK")
</pallas_src>

<mosaic_0001>
module attributes {stable_mosaic.version = 11 : i64} {
  func.func @critic_kernel(%arg0: i32, %arg1: memref<128x32xbf16, #tpu.memory_space<vmem>>, %arg2: memref<32x32xbf16, #tpu.memory_space<vmem>>, %arg3: memref<32x32xbf16, #tpu.memory_space<vmem>>, %arg4: memref<1x32xf32, #tpu.memory_space<vmem>>, %arg5: memref<2x32xf32, #tpu.memory_space<vmem>>, %arg6: memref<1x1xf32, #tpu.memory_space<vmem>>, %arg7: memref<128x1xf32, #tpu.memory_space<vmem>>) attributes {dimension_semantics = [#tpu.dimension_semantics<parallel>], iteration_bounds = array<i64: 2>, scalar_prefetch = 0 : i64, scratch_operands = 0 : i64, tpu.core_type = #tpu.core_type<tc>, window_params = [{transform_indices = @transform_0, window_bounds = array<i64: 128, 32>}, {pipeline_mode = #tpu.pipeline_mode<synchronous>, transform_indices = @transform_1, window_bounds = array<i64: 32, 32>}, {pipeline_mode = #tpu.pipeline_mode<synchronous>, transform_indices = @transform_2, window_bounds = array<i64: 32, 32>}, {pipeline_mode = #tpu.pipeline_mode<synchronous>, transform_indices = @transform_3, window_bounds = array<i64: 1, 32>}, {pipeline_mode = #tpu.pipeline_mode<synchronous>, transform_indices = @transform_4, window_bounds = array<i64: 2, 32>}, {pipeline_mode = #tpu.pipeline_mode<synchronous>, transform_indices = @transform_5, window_bounds = array<i64: 1, 1>}, {transform_indices = @transform_6, window_bounds = array<i64: 128, 1>}]} {
    %c0 = arith.constant 0 : index
    %c0_0 = arith.constant 0 : index
    %0 = vector.load %arg1[%c0, %c0_0] : memref<128x32xbf16, #tpu.memory_space<vmem>>, vector<128x32xbf16>
    %c0_1 = arith.constant 0 : index
    %c0_2 = arith.constant 0 : index
    %1 = vector.load %arg2[%c0_1, %c0_2] : memref<32x32xbf16, #tpu.memory_space<vmem>>, vector<32x32xbf16>
    %cst = arith.constant dense<0.000000e+00> : vector<128x32xf32>
    %2 = tpu.matmul %0, %1, %cst {dimension_numbers = #tpu.dot_dimension_numbers<[1], [0], [0], [1], [0, 0, 1, 1], [], []>} : vector<128x32xbf16>, vector<32x32xbf16>, vector<128x32xf32> -> vector<128x32xf32>
    %c0_3 = arith.constant 0 : index
    %c0_4 = arith.constant 0 : index
    %3 = vector.load %arg5[%c0_3, %c0_4] : memref<2x32xf32, #tpu.memory_space<vmem>>, vector<1x32xf32>
    %4 = vector.broadcast %3 : vector<1x32xf32> to vector<128x32xf32>
    %5 = arith.addf %2, %4 : vector<128x32xf32>
    %cst_5 = arith.constant 0.000000e+00 : f32
    %6 = vector.broadcast %cst_5 : f32 to vector<128x32xf32>
    %7 = arith.maximumf %5, %6 : vector<128x32xf32>
    %8 = arith.truncf %7 : vector<128x32xf32> to vector<128x32xbf16>
    %c0_6 = arith.constant 0 : index
    %c0_7 = arith.constant 0 : index
    %9 = vector.load %arg3[%c0_6, %c0_7] : memref<32x32xbf16, #tpu.memory_space<vmem>>, vector<32x32xbf16>
    %cst_8 = arith.constant dense<0.000000e+00> : vector<128x32xf32>
    %10 = tpu.matmul %8, %9, %cst_8 {dimension_numbers = #tpu.dot_dimension_numbers<[1], [0], [0], [1], [0, 0, 1, 1], [], []>} : vector<128x32xbf16>, vector<32x32xbf16>, vector<128x32xf32> -> vector<128x32xf32>
    %c1 = arith.constant 1 : index
    %c0_9 = arith.constant 0 : index
    %11 = vector.load %arg5[%c1, %c0_9] : memref<2x32xf32, #tpu.memory_space<vmem>>, vector<1x32xf32>
    %12 = vector.broadcast %11 : vector<1x32xf32> to vector<128x32xf32>
    %13 = arith.addf %10, %12 : vector<128x32xf32>
    %cst_10 = arith.constant 0.000000e+00 : f32
    %14 = vector.broadcast %cst_10 : f32 to vector<128x32xf32>
    %15 = arith.maximumf %13, %14 : vector<128x32xf32>
    %c0_11 = arith.constant 0 : index
    %c0_12 = arith.constant 0 : index
    %16 = vector.load %arg4[%c0_11, %c0_12] : memref<1x32xf32, #tpu.memory_space<vmem>>, vector<1x32xf32>
    %17 = vector.broadcast %16 : vector<1x32xf32> to vector<128x32xf32>
    %18 = arith.mulf %15, %17 : vector<128x32xf32>
    %cst_13 = arith.constant dense<0.000000e+00> : vector<128xf32>
    %19 = vector.multi_reduction <add>, %18, %cst_13 [1] : vector<128x32xf32> to vector<128xf32>
    %20 = vector.shape_cast %19 : vector<128xf32> to vector<128x1xf32>
    %c0_14 = arith.constant 0 : index
    %c0_15 = arith.constant 0 : index
    %21 = vector.load %arg6[%c0_14, %c0_15] : memref<1x1xf32, #tpu.memory_space<vmem>>, vector<1x1xf32>
    %22 = vector.broadcast %21 : vector<1x1xf32> to vector<128x1xf32>
    %23 = arith.addf %20, %22 : vector<128x1xf32>
    %c0_16 = arith.constant 0 : index
    %c0_17 = arith.constant 0 : index
    %24 = vector.load %arg7[%c0_16, %c0_17] : memref<128x1xf32, #tpu.memory_space<vmem>>, vector<128x1xf32>
    tpu.vector_store %arg7[%c0_16, %c0_17], %23 {strides = array<i32>} : memref<128x1xf32, #tpu.memory_space<vmem>>, vector<128x1xf32>,
    return
  }
  func.func @transform_0(%arg0: i32) -> (i32, i32) {
    %c0_i32 = arith.constant 0 : i32
    %c0_i32_0 = arith.constant 0 : i32
    return %arg0, %c0_i32 : i32, i32
  }
  func.func @transform_1(%arg0: i32) -> (i32, i32) {
    %c0_i32 = arith.constant 0 : i32
    %c0_i32_0 = arith.constant 0 : i32
    %c0_i32_1 = arith.constant 0 : i32
    return %c0_i32, %c0_i32_0 : i32, i32
  }
  func.func @transform_2(%arg0: i32) -> (i32, i32) {
    %c0_i32 = arith.constant 0 : i32
    %c0_i32_0 = arith.constant 0 : i32
    %c0_i32_1 = arith.constant 0 : i32
    return %c0_i32, %c0_i32_0 : i32, i32
  }
  func.func @transform_3(%arg0: i32) -> (i32, i32) {
    %c0_i32 = arith.constant 0 : i32
    %c0_i32_0 = arith.constant 0 : i32
    %c0_i32_1 = arith.constant 0 : i32
    return %c0_i32, %c0_i32_0 : i32, i32
  }
  func.func @transform_4(%arg0: i32) -> (i32, i32) {
    %c0_i32 = arith.constant 0 : i32
    %c0_i32_0 = arith.constant 0 : i32
    %c0_i32_1 = arith.constant 0 : i32
    return %c0_i32, %c0_i32_0 : i32, i32
  }
  func.func @transform_5(%arg0: i32) -> (i32, i32) {
    %c0_i32 = arith.constant 0 : i32
    %c0_i32_0 = arith.constant 0 : i32
    %c0_i32_1 = arith.constant 0 : i32
    return %c0_i32, %c0_i32_0 : i32, i32
  }
  func.func @transform_6(%arg0: i32) -> (i32, i32) {
    %c0_i32 = arith.constant 0 : i32
    %c0_i32_0 = arith.constant 0 : i32
    return %arg0, %c0_i32 : i32, i32
  }
}

</mosaic_0001>

<bundles_post_ra>
// kernel: tpu_custom_call.1
= control target key start
LH: loop header
LB: loop body
LE: loop exit
PB: predicated region body
PF: predicated region fallthrough
CT: control target
= control target key end

     0   :  { %s847_s23 = smov 0   ;;  %s991_s0 = inlined_call_operand.vmem [shape: bf16[256,32], index: 0, kind: input, shape index: {}]   ;;  %s992_s1 = inlined_call_operand.vmem [shape: bf16[32,32], index: 1, kind: input, shape index: {}]   ;;  %s993_s2 = inlined_call_operand.vmem [shape: bf16[32,32], index: 2, kind: input, shape index: {}]   ;;  %s994_s3 = inlined_call_operand.vmem [shape: f32[1,32], index: 3, kind: input, shape index: {}]   ;;  %s995_s4 = inlined_call_operand.vmem [shape: f32[2,32], index: 4, kind: input, shape index: {}]   ;;  %s996_s5 = inlined_call_operand.<no memory space> [shape: f32[1,1], index: 5, kind: input, shape index: {}]   ;;  %s997_s6 = inlined_call_operand.vmem [shape: f32[256,1], index: 6, kind: output, shape index: {}]  }
   0x1   :  { %v11_v0 = vstv %s996_s5 }
   0x2   :  { %12 = vst [vmem:[#allocation2] sm:$0x1] %v11_v0 }
   0x3 LB: > { %s698_s24 = sadd.s32 4294967295, %s807_s23   ;;  %p702_p0 = scmp.ge.s32.totalorder %s807_s23, 1  ;;  %s807_s23 = sphi %s847_s23, %s18_s23  }
   0x4   : > { %p215_p1 = scmp.lt.s32.totalorder %s807_s23, 3 }
   0x6   : > { %p216_p2 = pnand %p702_p0, %p215_p1 }
   0x7   : > { %s703_s5 = sshll.u32 (!%p216_p2), %s698_s24, 4 }
   0x8   : > { %219 = sbr.rel (%p216_p2) target bundleno = 481 (0x1e1), region = 44  ;;  %p246_p3 = scmp.lt.s32.totalorder (!%p216_p2), %s703_s5, 31 }
   0xd   : > { %v782_v1 = vld [vmem:[%s992_s1 + $0x8] sm:$0xff]  ;;  %v781_v2 = vld [vmem:[%s992_s1] sm:$0xff]  ;;  %s999_s5 = smov (!%p246_p3, %s703_s5), 31  ;;  %vm332_vm0 = vcmask 261120   ;;  %vm625_vm1 = vcmask 7168  }
   0xe   : > { %363 = vmatpush.bf16.msra.mxu0 %v782_v1  ;;  %785 = vmatpush.bf16.msra.mxu2 %v782_v1  ;;  %s704_s29 = sshll.u32 %s999_s5, 2  ;;  %v784_v11 = vld [vmem:[%s993_s2 + $0x8] sm:$0xff]  ;;  %v783_v12 = vld [vmem:[%s993_s2] sm:$0xff]  ;;  %s706_s19 = sshll.u32 %s999_s5, 3 }
   0xf   : > { %s249_s8 = scalar_lea.vmem %s991_s0, %s704_s29  ;;  %478 = vmatpush.bf16.msra.mxu1 %v784_v11  ;;  %787 = vmatpush.bf16.msra.mxu3 %v784_v11  ;;  %v797_v14 = vld [vmem:[%s995_s4] ss:$0 sm:$0xff]  ;;  %s954_s22 = scalar_lea.vmem %s997_s6, %s706_s19 }
  0x10   : > { %v773_v3 = vld [vmem:[%s249_s8] sm:$0xff]  ;;  %v774_v5 = vld [vmem:[%s249_s8 + $0x8] sm:$0xff]  ;;  %v775_v7 = vld [vmem:[%s249_s8 + $0x10] sm:$0xff] }
  0x11   : > { %v777_v4 = vld [vmem:[%s249_s8 + $0x20] sm:$0xff]  ;;  %v778_v6 = vld [vmem:[%s249_s8 + $0x28] sm:$0xff]  ;;  %v779_v8 = vld [vmem:[%s249_s8 + $0x30] sm:$0xff] }
  0x12   : > { %364 = vmatpush.bf16.msra.mxu0 %v781_v2  ;;  %786 = vmatpush.bf16.msra.mxu2 %v781_v2  ;;  %v776_v9 = vld [vmem:[%s249_s8 + $0x18] sm:$0xff] }
  0x13   : > { %v780_v10 = vld [vmem:[%s249_s8 + $0x38] sm:$0xff]  ;;  %479 = vmatpush.bf16.msra.mxu1 %v783_v12  ;;  %788 = vmatpush.bf16.msra.mxu3 %v783_v12 }
  0x15   : > { %747 = vmatmul.msk.bf16.vlgmr.msra.gmra.mxu0 %vm332_vm0, %v773_v3  ;;  %751 = vmatmul.msk.bf16.vlgmr.msra.gmra.mxu2 %vm332_vm0, %v777_v4 }
  0x25   : > { %748 = vmatmul.msk.bf16.gmra.mxu0 %vm332_vm0, %v774_v5  ;;  %752 = vmatmul.msk.bf16.gmra.mxu2 %vm332_vm0, %v778_v6  ;;  %v895_v6 = vld [vmem:[%s995_s4 + $0x1] ss:$0 sm:$0xff] }
  0x35   : > { %749 = vmatmul.msk.bf16.gmra.mxu0 %vm332_vm0, %v775_v7  ;;  %753 = vmatmul.msk.bf16.gmra.mxu2 %vm332_vm0, %v779_v8 }
  0x45   : > { %750 = vmatmul.msk.bf16.gmra.mxu0 %vm332_vm0, %v776_v9  ;;  %754 = vmatmul.msk.bf16.gmra.mxu2 %vm332_vm0, %v780_v10  ;;  %v901_v9 = vld [vmem:[%s994_s3] ss:$0 sm:$0xff] }
  0x92   : > { %v366_v13 = vpop.f32.mrf.mxu0 }
  0x93   : > { %v367_v16 = vadd.f32 %v797_v14, %v366_v13 }
  0x95   : > { %v406_v19 = vmax.f32 %v367_v16, 0.0 }
  0x98   : > { %v386_v15 = vpop.f32.mrf.mxu2 }
  0x99   : > { %v387_v21 = vadd.f32 %v797_v14, %v386_v15 }
  0x9a   : > { %v368_v17 = vpop.f32.mrf.mxu0 }
  0x9b   : > { %v369_v18 = vadd.f32 %v797_v14, %v368_v17  ;;  %v414_v26 = vmax.f32 %v387_v21, 0.0 }
  0x9d   : > { %v407_v20 = vmax.f32 %v369_v18, 0.0 }
  0x9f   : > { %v422_v22 = vpack.c.bf16 %v407_v20, %v406_v19 }
  0xa0   : > { %v388_v23 = vpop.f32.mrf.mxu2 }
  0xa1   : > { %v389_v24 = vadd.f32 %v797_v14, %v388_v23  ;;  %763 = vmatmul.msk.bf16.vlgmr.msra.gmra.mxu1 %vm332_vm0, %v422_v22 }
  0xa2   : > { %v371_v25 = vpop.f32.mrf.mxu0 }
  0xa3   : > { %v415_v27 = vmax.f32 %v389_v24, 0.0  ;;  %v372_v30 = vadd.f32 %v797_v14, %v371_v25 }
  0xa5   : > { %v426_v28 = vpack.c.bf16 %v415_v27, %v414_v26  ;;  %v408_v33 = vmax.f32 %v372_v30, 0.0 }
  0xa7   : > { %767 = vmatmul.msk.bf16.vlgmr.msra.gmra.mxu3 %vm332_vm0, %v426_v28 }
  0xa8   : > { %v391_v29 = vpop.f32.mrf.mxu2 }
  0xa9   : > { %v392_v35 = vadd.f32 %v797_v14, %v391_v29 }
  0xaa   : > { %v373_v31 = vpop.f32.mrf.mxu0 }
  0xab   : > { %v374_v32 = vadd.f32 %v797_v14, %v373_v31  ;;  %v416_v40 = vmax.f32 %v392_v35, 0.0 }
  0xad   : > { %v409_v34 = vmax.f32 %v374_v32, 0.0 }
  0xaf   : > { %v423_v36 = vpack.c.bf16 %v409_v34, %v408_v33 }
  0xb0   : > { %v393_v37 = vpop.f32.mrf.mxu2 }
  0xb1   : > { %v394_v38 = vadd.f32 %v797_v14, %v393_v37  ;;  %764 = vmatmul.msk.bf16.gmra.mxu1 %vm332_vm0, %v423_v36 }
  0xb2   : > { %v376_v39 = vpop.f32.mrf.mxu0 }
  0xb3   : > { %v417_v41 = vmax.f32 %v394_v38, 0.0  ;;  %v377_v44 = vadd.f32 %v797_v14, %v376_v39 }
  0xb5   : > { %v427_v42 = vpack.c.bf16 %v417_v41, %v416_v40  ;;  %v410_v47 = vmax.f32 %v377_v44, 0.0 }
  0xb7   : > { %768 = vmatmul.msk.bf16.gmra.mxu3 %vm332_vm0, %v427_v42 }
  0xb8   : > { %v396_v43 = vpop.f32.mrf.mxu2 }
  0xb9   : > { %v397_v49 = vadd.f32 %v797_v14, %v396_v43 }
  0xba   : > { %v378_v45 = vpop.f32.mrf.mxu0 }
  0xbb   : > { %v379_v46 = vadd.f32 %v797_v14, %v378_v45  ;;  %v418_v54 = vmax.f32 %v397_v49, 0.0 }
  0xbd   : > { %v411_v48 = vmax.f32 %v379_v46, 0.0 }
  0xbf   : > { %v424_v50 = vpack.c.bf16 %v411_v48, %v410_v47 }
  0xc0   : > { %v398_v51 = vpop.f32.mrf.mxu2 }
  0xc1   : > { %v399_v52 = vadd.f32 %v797_v14, %v398_v51  ;;  %765 = vmatmul.msk.bf16.gmra.mxu1 %vm332_vm0, %v424_v50 }
  0xc2   : > { %v381_v53 = vpop.f32.mrf.mxu0 }
  0xc3   : > { %v419_v55 = vmax.f32 %v399_v52, 0.0  ;;  %v382_v58 = vadd.f32 %v797_v14, %v381_v53 }
  0xc5   : > { %v428_v56 = vpack.c.bf16 %v419_v55, %v418_v54  ;;  %v412_v61 = vmax.f32 %v382_v58, 0.0 }
  0xc7   : > { %769 = vmatmul.msk.bf16.gmra.mxu3 %vm332_vm0, %v428_v56 }
  0xc8   : > { %v401_v57 = vpop.f32.mrf.mxu2 }
  0xc9   : > { %v402_v63 = vadd.f32 %v797_v14, %v401_v57 }
  0xca   : > { %v383_v59 = vpop.f32.mrf.mxu0 }
  0xcb   : > { %v384_v60 = vadd.f32 %v797_v14, %v383_v59  ;;  %v420_v3 = vmax.f32 %v402_v63, 0.0 }
  0xcd   : > { %v413_v62 = vmax.f32 %v384_v60, 0.0 }
  0xcf   : > { %v425_v0 = vpack.c.bf16 %v413_v62, %v412_v61 }
  0xd0   : > { %v403_v1 = vpop.f32.mrf.mxu2 }
  0xd1   : > { %v404_v2 = vadd.f32 %v797_v14, %v403_v1  ;;  %766 = vmatmul.msk.bf16.gmra.mxu1 %vm332_vm0, %v425_v0 }
  0xd3   : > { %v421_v4 = vmax.f32 %v404_v2, 0.0 }
  0xd5   : > { %v429_v5 = vpack.c.bf16 %v421_v4, %v420_v3 }
  0xd7   : > { %770 = vmatmul.msk.bf16.gmra.mxu3 %vm332_vm0, %v429_v5 }
 0x11e   : > { %v481_v7 = vpop.f32.mrf.mxu1 }
 0x11f   : > { %v482_v8 = vadd.f32 %v895_v6, %v481_v7 }
 0x121   : > { %v521_v10 = vmax.f32 %v482_v8, 0.0 }
 0x123   : > { %v541_v11 = vmul.f32 %v901_v9, %v521_v10 }
 0x125   : > { %v557_v12 = vsel %vm332_vm0, %v541_v11, 0.0 }
 0x126   : > { %v483_v13 = vpop.f32.mrf.mxu1  ;;  %558 = vadd.xlane.f32.xlu0 %v557_v12 }
 0x127   : > { %v484_v14 = vadd.f32 %v895_v6, %v483_v13 }
 0x129   : > { %v522_v15 = vmax.f32 %v484_v14, 0.0 }
 0x12a   : > { %v501_v16 = vpop.f32.mrf.mxu3 }
 0x12b   : > { %v502_v17 = vadd.f32 %v895_v6, %v501_v16  ;;  %v542_v18 = vmul.f32 %v901_v9, %v522_v15 }
 0x12d   : > { %v529_v19 = vmax.f32 %v502_v17, 0.0  ;;  %v560_v20 = vsel %vm332_vm0, %v542_v18, 0.0 }
 0x12e   : > { %v486_v21 = vpop.f32.mrf.mxu1  ;;  %561 = vadd.xlane.f32.xlu0 %v560_v20 }
 0x12f   : > { %v487_v22 = vadd.f32 %v895_v6, %v486_v21  ;;  %v549_v23 = vmul.f32 %v901_v9, %v529_v19 }
 0x131   : > { %v523_v24 = vmax.f32 %v487_v22, 0.0  ;;  %v581_v25 = vsel %vm332_vm0, %v549_v23, 0.0 }
 0x132   : > { %v503_v26 = vpop.f32.mrf.mxu3  ;;  %582 = vadd.xlane.f32.xlu2 %v581_v25 }
 0x133   : > { %v504_v27 = vadd.f32 %v895_v6, %v503_v26  ;;  %v543_v28 = vmul.f32 %v901_v9, %v523_v24  ;;  %v800_v26 = vld [vmem:[#allocation2] ss:$0 sm:$0xff] }
 0x135   : > { %v530_v29 = vmax.f32 %v504_v27, 0.0  ;;  %v563_v30 = vsel %vm332_vm0, %v543_v28, 0.0 }
 0x136   : > { %v488_v31 = vpop.f32.mrf.mxu1  ;;  %564 = vadd.xlane.f32.xlu1 %v563_v30 }
 0x137   : > { %v489_v32 = vadd.f32 %v895_v6, %v488_v31  ;;  %v550_v33 = vmul.f32 %v901_v9, %v530_v29 }
 0x139   : > { %v524_v34 = vmax.f32 %v489_v32, 0.0  ;;  %v584_v35 = vsel %vm332_vm0, %v550_v33, 0.0 }
 0x13a   : > { %v506_v36 = vpop.f32.mrf.mxu3  ;;  %585 = vadd.xlane.f32.xlu0 %v584_v35 }
 0x13b   : > { %v507_v37 = vadd.f32 %v895_v6, %v506_v36  ;;  %v544_v38 = vmul.f32 %v901_v9, %v524_v34 }
 0x13d   : > { %v531_v39 = vmax.f32 %v507_v37, 0.0  ;;  %v566_v40 = vsel %vm332_vm0, %v544_v38, 0.0 }
 0x13e   : > { %v491_v41 = vpop.f32.mrf.mxu1  ;;  %567 = vadd.xlane.f32.xlu1 %v566_v40 }
 0x13f   : > { %v492_v42 = vadd.f32 %v895_v6, %v491_v41  ;;  %v551_v44 = vmul.f32 %v901_v9, %v531_v39 }
 0x141   : > { %v525_v43 = vmax.f32 %v492_v42, 0.0  ;;  %v587_v50 = vsel %vm332_vm0, %v551_v44, 0.0 }
 0x142   : > { %v508_v45 = vpop.f32.mrf.mxu3 }
 0x143   : > { %v509_v46 = vadd.f32 %v895_v6, %v508_v45  ;;  %v545_v47 = vmul.f32 %v901_v9, %v525_v43 }
 0x145   : > { %v532_v48 = vmax.f32 %v509_v46, 0.0  ;;  %v569_v49 = vsel %vm332_vm0, %v545_v47, 0.0 }
 0x146   : > { %v493_v51 = vpop.f32.mrf.mxu1  ;;  %570 = vadd.xlane.f32.xlu2 %v569_v49  ;;  %588 = vadd.xlane.f32.xlu1 %v587_v50 }
 0x147   : > { %v494_v52 = vadd.f32 %v895_v6, %v493_v51  ;;  %v552_v53 = vmul.f32 %v901_v9, %v532_v48 }
 0x149   : > { %v526_v56 = vmax.f32 %v494_v52, 0.0  ;;  %v590_v58 = vsel %vm332_vm0, %v552_v53, 0.0 }
 0x14a   : > { %v511_v54 = vpop.f32.mrf.mxu3 }
 0x14b   : > { %v512_v55 = vadd.f32 %v895_v6, %v511_v54  ;;  %v546_v0 = vmul.f32 %v901_v9, %v526_v56 }
 0x14d   : > { %v533_v57 = vmax.f32 %v512_v55, 0.0  ;;  %v572_v2 = vsel %vm332_vm0, %v546_v0, 0.0 }
 0x14e   : > { %v496_v59 = vpop.f32.mrf.mxu1  ;;  %591 = vadd.xlane.f32.xlu2 %v590_v58 }
 0x14f   : > { %v497_v60 = vadd.f32 %v895_v6, %v496_v59  ;;  %v553_v61 = vmul.f32 %v901_v9, %v533_v57 }
 0x151   : > { %v527_v62 = vmax.f32 %v497_v60, 0.0  ;;  %v593_v63 = vsel %vm332_vm0, %v553_v61, 0.0 }
 0x152   : > { %v513_v1 = vpop.f32.mrf.mxu3  ;;  %594 = vadd.xlane.f32.xlu0 %v593_v63 }
 0x153   : > { %v547_v3 = vmul.f32 %v901_v9, %v527_v62  ;;  %v514_v7 = vadd.f32 %v895_v6, %v513_v1 }
 0x155   : > { %v575_v10 = vsel %vm332_vm0, %v547_v3, 0.0  ;;  %v534_v14 = vmax.f32 %v514_v7, 0.0 }
 0x156   : > { %v498_v4 = vpop.f32.mrf.mxu1  ;;  %573 = vadd.xlane.f32.xlu2 %v572_v2 }
 0x157   : > { %v499_v5 = vadd.f32 %v895_v6, %v498_v4  ;;  %v554_v19 = vmul.f32 %v901_v9, %v534_v14 }
 0x159   : > { %v528_v8 = vmax.f32 %v499_v5, 0.0  ;;  %v596_v23 = vsel %vm332_vm0, %v554_v19, 0.0 }
 0x15a   : > { %v516_v11 = vpop.f32.mrf.mxu3  ;;  %576 = vadd.xlane.f32.xlu0 %v575_v10 }
 0x15b   : > { %v517_v12 = vadd.f32 %v895_v6, %v516_v11  ;;  %v548_v13 = vmul.f32 %v901_v9, %v528_v8 }
 0x15d   : > { %v535_v15 = vmax.f32 %v517_v12, 0.0  ;;  %v578_v16 = vsel %vm332_vm0, %v548_v13, 0.0 }
 0x15e   : > { %579 = vadd.xlane.f32.xlu1 %v578_v16 }
 0x15f   : > { %v555_v17 = vmul.f32 %v901_v9, %v535_v15 }
 0x161   : > { %v599_v18 = vsel %vm332_vm0, %v555_v17, 0.0 }
 0x162   : > { %v518_v20 = vpop.f32.mrf.mxu3  ;;  %600 = vadd.xlane.f32.xlu2 %v599_v18 }
 0x163   : > { %v519_v21 = vadd.f32 %v895_v6, %v518_v20 }
 0x165   : > { %v536_v22 = vmax.f32 %v519_v21, 0.0 }
 0x166   : > { %597 = vadd.xlane.f32.xlu1 %v596_v23 }
 0x167   : > { %v556_v24 = vmul.f32 %v901_v9, %v536_v22 }
 0x169   : > { %v602_v25 = vsel %vm332_vm0, %v556_v24, 0.0 }
 0x16a   : > { %603 = vadd.xlane.f32.xlu0 %v602_v25 }
 0x199   : > { %v559_v6 = vpop.xlane.xlu0 %558 }
 0x19a   : > { %v609_v27 = vadd.f32 %v800_v26, %v559_v6 }
 0x19c   : > { %626 = vst.msk [vmem:[%s954_s22] sm:$0xff] %vm625_vm1, %v609_v27 }
 0x1a1   : > { %v562_v9 = vpop.xlane.xlu0 %561 }
 0x1a2   : > { %v610_v28 = vadd.f32 %v800_v26, %v562_v9 }
 0x1a4   : > { %627 = vst.msk [vmem:[%s954_s22 + $0x8] sm:$0xff] %vm625_vm1, %v610_v28 }
 0x1a5   : > { %v583_v29 = vpop.xlane.xlu2 %582 }
 0x1a6   : > { %v617_v30 = vadd.f32 %v800_v26, %v583_v29 }
 0x1a8   : > { %634 = vst.msk [vmem:[%s954_s22 + $0x40] sm:$0xff] %vm625_vm1, %v617_v30 }
 0x1a9   : > { %v565_v31 = vpop.xlane.xlu1 %564 }
 0x1aa   : > { %v611_v32 = vadd.f32 %v800_v26, %v565_v31 }
 0x1ac   : > { %628 = vst.msk [vmem:[%s954_s22 + $0x10] sm:$0xff] %vm625_vm1, %v611_v32 }
 0x1ad   : > { %v586_v33 = vpop.xlane.xlu0 %585 }
 0x1ae   : > { %v618_v34 = vadd.f32 %v800_v26, %v586_v33 }
 0x1b0   : > { %635 = vst.msk [vmem:[%s954_s22 + $0x48] sm:$0xff] %vm625_vm1, %v618_v34 }
 0x1b1   : > { %v568_v35 = vpop.xlane.xlu1 %567 }
 0x1b2   : > { %v612_v36 = vadd.f32 %v800_v26, %v568_v35 }
 0x1b4   : > { %629 = vst.msk [vmem:[%s954_s22 + $0x18] sm:$0xff] %vm625_vm1, %v612_v36 }
 0x1b9   : > { %v571_v37 = vpop.xlane.xlu2 %570  ;;  %v589_v38 = vpop.xlane.xlu1 %588 }
 0x1ba   : > { %v613_v39 = vadd.f32 %v800_v26, %v571_v37  ;;  %v619_v40 = vadd.f32 %v800_v26, %v589_v38 }
 0x1bc   : > { %630 = vst.msk [vmem:[%s954_s22 + $0x20] sm:$0xff] %vm625_vm1, %v613_v39 }
 0x1bd   : > { %636 = vst.msk [vmem:[%s954_s22 + $0x50] sm:$0xff] %vm625_vm1, %v619_v40 }
 0x1c1   : > { %v592_v41 = vpop.xlane.xlu2 %591 }
 0x1c2   : > { %v620_v42 = vadd.f32 %v800_v26, %v592_v41 }
 0x1c4   : > { %637 = vst.msk [vmem:[%s954_s22 + $0x58] sm:$0xff] %vm625_vm1, %v620_v42 }
 0x1c5   : > { %v595_v43 = vpop.xlane.xlu0 %594 }
 0x1c6   : > { %v621_v44 = vadd.f32 %v800_v26, %v595_v43 }
 0x1c8   : > { %638 = vst.msk [vmem:[%s954_s22 + $0x60] sm:$0xff] %vm625_vm1, %v621_v44 }
 0x1c9   : > { %v574_v45 = vpop.xlane.xlu2 %573 }
 0x1ca   : > { %v614_v46 = vadd.f32 %v800_v26, %v574_v45 }
 0x1cc   : > { %631 = vst.msk [vmem:[%s954_s22 + $0x28] sm:$0xff] %vm625_vm1, %v614_v46 }
 0x1cd   : > { %v577_v47 = vpop.xlane.xlu0 %576 }
 0x1ce   : > { %v615_v48 = vadd.f32 %v800_v26, %v577_v47 }
 0x1d0   : > { %632 = vst.msk [vmem:[%s954_s22 + $0x30] sm:$0xff] %vm625_vm1, %v615_v48 }
 0x1d1   : > { %v580_v49 = vpop.xlane.xlu1 %579 }
 0x1d2   : > { %v616_v50 = vadd.f32 %v800_v26, %v580_v49 }
 0x1d4   : > { %633 = vst.msk [vmem:[%s954_s22 + $0x38] sm:$0xff] %vm625_vm1, %v616_v50 }
 0x1d5   : > { %v601_v51 = vpop.xlane.xlu2 %600 }
 0x1d6   : > { %v623_v52 = vadd.f32 %v800_v26, %v601_v51 }
 0x1d8   : > { %640 = vst.msk [vmem:[%s954_s22 + $0x70] sm:$0xff] %vm625_vm1, %v623_v52 }
 0x1d9   : > { %v598_v53 = vpop.xlane.xlu1 %597 }
 0x1da   : > { %v622_v54 = vadd.f32 %v800_v26, %v598_v53 }
 0x1dc   : > { %639 = vst.msk [vmem:[%s954_s22 + $0x68] sm:$0xff] %vm625_vm1, %v622_v54 }
 0x1dd   : > { %v604_v55 = vpop.xlane.xlu0 %603 }
 0x1de   : > { %v624_v56 = vadd.f32 %v800_v26, %v604_v55 }
 0x1e0   : > { %641 = vst.msk [vmem:[%s954_s22 + $0x78] sm:$0xff] %vm625_vm1, %v624_v56 }
 0x1e1 PF: > { %s18_s23 = sadd.s32 1, %s807_s23  }
 0x1e2   : > { %p15_p4 = scmp.ge.s32.totalorder %s18_s23, 4  }
 0x1e4   :  { %17 = sbr.rel (!%p15_p4) target bundleno = 3 (0x3), region = 74 }

</bundles_post_ra>
